<compile_context>
chip_gen: v7x
topology: tpu7x:2x2x1
jax: 0.10.0
libtpu: 0.0.40
codegen_flags: <defaults>
</compile_context>

<pallas_src>
import numpy as np
import jax
import jax.numpy as jnp
from jax import lax
from jax.experimental import pallas as pl
from jax.experimental.pallas import tpu as pltpu


def _make_kernel(H, W, Cin, Cout):
    HW = H * W
    taps = [(kh - 1, kw - 1) for kh in range(3) for kw in range(3)]

    def kernel(x_ref, w1_ref, s1_ref, b1_ref, w2_ref, s2_ref, b2_ref,
               mask_ref, out_ref, col_ref):
        # x_ref:    (1, Cin, HW)   channels on sublanes, pixels on lanes
        # w*_ref:   (Cout, 9*C)    prepacked im2col weights
        # s*/b*:    (Cout, 1)      folded BatchNorm scale / bias
        # mask_ref: (9, HW)        per-tap edge-validity masks (0/1)
        # out_ref:  (1, Cout, HW)
        # col_ref:  (9*C, HW)      VMEM scratch for the im2col matrix
        x2d = x_ref[0].astype(jnp.float32)                      # (Cin, HW)

        def im2col(a2d, C):
            # Write the 9 spatially-shifted (and edge-masked) copies of a2d
            # into col_ref.  Shifts are static lane rotations (XLU); masks zero
            # every element that wrapped across an image border.
            for t, (dh, dw) in enumerate(taps):
                delta = dh * W + dw
                if delta == 0:
                    tap = a2d                                   # center tap: mask == 1
                else:
                    shifted = pltpu.roll(a2d, shift=(-delta) % HW, axis=1)
                    tap = shifted * mask_ref[t:t + 1, :]
                col_ref[t * C:(t + 1) * C, :] = tap

        # ---- conv1 (3x3) + BN + ReLU : one MXU matmul ----
        im2col(x2d, Cin)
        out1 = jnp.dot(w1_ref[...], col_ref[...],
                       preferred_element_type=jnp.float32)       # (Cout, HW)
        out1 = jnp.maximum(out1 * s1_ref[...] + b1_ref[...], 0.0)

        # ---- conv2 (3x3) + BN : one MXU matmul ----
        im2col(out1, Cout)
        out2 = jnp.dot(w2_ref[...], col_ref[...],
                       preferred_element_type=jnp.float32)       # (Cout, HW)
        out2 = out2 * s2_ref[...] + b2_ref[...]

        # ---- residual add (downsample=None, stride=1, Cin==Cout) ----
        out_ref[0] = (out2 + x2d).astype(out_ref.dtype)

    return kernel


def basic_block_pallas(x_nchw, w1, s1, b1, w2, s2, b2):
    """x_nchw: (N, C, H, W) f32.  w*: (3,3,Cin,Cout) HWIO.  s*/b*: (Cout,)."""
    N, Cin, H, W = x_nchw.shape
    Cout = w1.shape[-1]
    # Only the downsample=None / stride=1 / dilation=1 BasicBlock config.
    assert Cin == Cout and w1.shape[:2] == (3, 3) and w2.shape[:2] == (3, 3)
    HW = H * W

    # Free reshape (merges trailing dims): stay channels-major, lane-dense H*W.
    x_flat = x_nchw.reshape(N, Cin, HW)

    # Prepack weights to (Cout, 9*Cin); rows ordered tap-major then channel,
    # matching the im2col layout built in-kernel.  BN scale/bias -> (Cout, 1).
    w1m = jnp.transpose(w1, (3, 0, 1, 2)).reshape(Cout, 9 * Cin)
    w2m = jnp.transpose(w2, (3, 0, 1, 2)).reshape(Cout, 9 * Cout)
    s1c, b1c = s1.reshape(Cout, 1), b1.reshape(Cout, 1)
    s2c, b2c = s2.reshape(Cout, 1), b2.reshape(Cout, 1)

    # Per-tap edge-validity masks (tiny compile-time constants, passed as input).
    taps = [(kh - 1, kw - 1) for kh in range(3) for kw in range(3)]
    hh, ww = np.meshgrid(np.arange(H), np.arange(W), indexing="ij")
    masks = np.stack(
        [((hh + dh >= 0) & (hh + dh < H) & (ww + dw >= 0) & (ww + dw < W))
         .reshape(HW) for dh, dw in taps]).astype(np.float32)     # (9, HW)

    kernel = _make_kernel(H, W, Cin, Cout)

    out_flat = pl.pallas_call(
        kernel,
        out_shape=jax.ShapeDtypeStruct((N, Cout, HW), x_nchw.dtype),
        grid=(N,),
        in_specs=[
            pl.BlockSpec((1, Cin, HW), lambda n: (n, 0, 0)),
            pl.BlockSpec((Cout, 9 * Cin), lambda n: (0, 0)),
            pl.BlockSpec((Cout, 1), lambda n: (0, 0)),
            pl.BlockSpec((Cout, 1), lambda n: (0, 0)),
            pl.BlockSpec((Cout, 9 * Cout), lambda n: (0, 0)),
            pl.BlockSpec((Cout, 1), lambda n: (0, 0)),
            pl.BlockSpec((Cout, 1), lambda n: (0, 0)),
            pl.BlockSpec((9, HW), lambda n: (0, 0)),
        ],
        out_specs=pl.BlockSpec((1, Cout, HW), lambda n: (n, 0, 0)),
        scratch_shapes=[pltpu.VMEM((9 * Cin, HW), jnp.float32)],
        compiler_params=pltpu.CompilerParams(
            dimension_semantics=("parallel",)),
    )(x_flat, w1m, s1c, b1c, w2m, s2c, b2c, jnp.asarray(masks))

    return out_flat.reshape(N, Cout, H, W)


def fold_bn(gamma, beta, mean, var, eps=1e-5):
    scale = gamma / jnp.sqrt(var + eps)
    bias = beta - mean * scale
    return scale, bias


def reference_basic_block(x_nchw, w1, s1, b1, w2, s2, b2):
    """Plain-JAX reference (NHWC convs) for correctness checking."""
    x = jnp.transpose(x_nchw, (0, 2, 3, 1))
    dn = ('NHWC', 'HWIO', 'NHWC')
    out = lax.conv_general_dilated(x, w1, (1, 1), ((1, 1), (1, 1)),
                                   dimension_numbers=dn)
    out = jnp.maximum(out * s1.reshape(1, 1, 1, -1) + b1.reshape(1, 1, 1, -1), 0.0)
    out = lax.conv_general_dilated(out, w2, (1, 1), ((1, 1), (1, 1)),
                                   dimension_numbers=dn)
    out = out * s2.reshape(1, 1, 1, -1) + b2.reshape(1, 1, 1, -1)
    out = out + x
    return jnp.transpose(out, (0, 3, 1, 2))


if __name__ == "__main__":
    # BasicBlock(inplanes=4, planes=4, stride=1, downsample=None, pad=1, dilation=1)
    N, C, H, W = 2, 4, 16, 16
    planes = C

    key = jax.random.PRNGKey(0)
    keys = jax.random.split(key, 11)

    x = jax.random.normal(keys[0], (N, C, H, W), jnp.float32)

    # conv weights (HWIO layout), no bias (bias=False in convbn)
    w1 = jax.random.normal(keys[1], (3, 3, C, planes), jnp.float32) * 0.1
    w2 = jax.random.normal(keys[2], (3, 3, planes, planes), jnp.float32) * 0.1

    # BatchNorm parameters (fixed affine stats), folded to scale/bias
    g1 = 1.0 + 0.1 * jax.random.normal(keys[3], (planes,), jnp.float32)
    be1 = 0.1 * jax.random.normal(keys[4], (planes,), jnp.float32)
    m1 = 0.1 * jax.random.normal(keys[5], (planes,), jnp.float32)
    v1 = 1.0 + 0.1 * jnp.abs(jax.random.normal(keys[6], (planes,), jnp.float32))
    g2 = 1.0 + 0.1 * jax.random.normal(keys[7], (planes,), jnp.float32)
    be2 = 0.1 * jax.random.normal(keys[8], (planes,), jnp.float32)
    m2 = 0.1 * jax.random.normal(keys[9], (planes,), jnp.float32)
    v2 = 1.0 + 0.1 * jnp.abs(jax.random.normal(keys[10], (planes,), jnp.float32))

    s1, b1 = fold_bn(g1, be1, m1, v1)
    s2, b2 = fold_bn(g2, be2, m2, v2)

    out = basic_block_pallas(x, w1, s1, b1, w2, s2, b2)
    out = jax.block_until_ready(out)

    ref = reference_basic_block(x, w1, s1, b1, w2, s2, b2)
    ref = jax.block_until_ready(ref)

    assert out.shape == (N, C, H, W)
    np.testing.assert_allclose(np.asarray(out), np.asarray(ref),
                               rtol=1e-4, atol=1e-4)
    print("KERNEL_OK")
</pallas_src>

<mosaic_0001>
module attributes {stable_mosaic.version = 11 : i64} {
  func.func @kernel(%arg0: i32, %arg1: memref<1x4x256xf32, #tpu.memory_space<vmem>>, %arg2: memref<4x36xf32, #tpu.memory_space<vmem>>, %arg3: memref<4x1xf32, #tpu.memory_space<vmem>>, %arg4: memref<4x1xf32, #tpu.memory_space<vmem>>, %arg5: memref<4x36xf32, #tpu.memory_space<vmem>>, %arg6: memref<4x1xf32, #tpu.memory_space<vmem>>, %arg7: memref<4x1xf32, #tpu.memory_space<vmem>>, %arg8: memref<9x256xf32, #tpu.memory_space<vmem>>, %arg9: memref<1x4x256xf32, #tpu.memory_space<vmem>>, %arg10: memref<36x256xf32, #tpu.memory_space<vmem>>) attributes {dimension_semantics = [#tpu.dimension_semantics<parallel>], iteration_bounds = array<i64: 2>, scalar_prefetch = 0 : i64, scratch_operands = 1 : i64, tpu.core_type = #tpu.core_type<tc>, window_params = [{transform_indices = @transform_0, window_bounds = array<i64: 1, 4, 256>}, {pipeline_mode = #tpu.pipeline_mode<synchronous>, transform_indices = @transform_1, window_bounds = array<i64: 4, 36>}, {pipeline_mode = #tpu.pipeline_mode<synchronous>, transform_indices = @transform_2, window_bounds = array<i64: 4, 1>}, {pipeline_mode = #tpu.pipeline_mode<synchronous>, transform_indices = @transform_3, window_bounds = array<i64: 4, 1>}, {pipeline_mode = #tpu.pipeline_mode<synchronous>, transform_indices = @transform_4, window_bounds = array<i64: 4, 36>}, {pipeline_mode = #tpu.pipeline_mode<synchronous>, transform_indices = @transform_5, window_bounds = array<i64: 4, 1>}, {pipeline_mode = #tpu.pipeline_mode<synchronous>, transform_indices = @transform_6, window_bounds = array<i64: 4, 1>}, {pipeline_mode = #tpu.pipeline_mode<synchronous>, transform_indices = @transform_7, window_bounds = array<i64: 9, 256>}, {transform_indices = @transform_8, window_bounds = array<i64: 1, 4, 256>}]} {
    %c0 = arith.constant 0 : index
    %c0_0 = arith.constant 0 : index
    %c0_1 = arith.constant 0 : index
    %0 = vector.load %arg1[%c0, %c0_0, %c0_1] : memref<1x4x256xf32, #tpu.memory_space<vmem>>, vector<1x4x256xf32>
    %1 = vector.shape_cast %0 : vector<1x4x256xf32> to vector<4x256xf32>
    %c17_i32 = arith.constant 17 : i32
    %2 = tpu.dynamic_rotate %1 by %c17_i32 dim 1 : vector<4x256xf32>, i32 -> vector<4x256xf32>
    %c0_2 = arith.constant 0 : index
    %c0_3 = arith.constant 0 : index
    %3 = vector.load %arg8[%c0_2, %c0_3] : memref<9x256xf32, #tpu.memory_space<vmem>>, vector<1x256xf32>
    %4 = vector.broadcast %3 : vector<1x256xf32> to vector<4x256xf32>
    %5 = arith.mulf %2, %4 : vector<4x256xf32>
    %c0_4 = arith.constant 0 : index
    %c0_5 = arith.constant 0 : index
    %6 = vector.load %arg10[%c0_4, %c0_5] : memref<36x256xf32, #tpu.memory_space<vmem>>, vector<4x256xf32>
    tpu.vector_store %arg10[%c0_4, %c0_5], %5 {strides = array<i32>} : memref<36x256xf32, #tpu.memory_space<vmem>>, vector<4x256xf32>,
    %c16_i32 = arith.constant 16 : i32
    %7 = tpu.dynamic_rotate %1 by %c16_i32 dim 1 : vector<4x256xf32>, i32 -> vector<4x256xf32>
    %c1 = arith.constant 1 : index
    %c0_6 = arith.constant 0 : index
    %8 = vector.load %arg8[%c1, %c0_6] : memref<9x256xf32, #tpu.memory_space<vmem>>, vector<1x256xf32>
    %9 = vector.broadcast %8 : vector<1x256xf32> to vector<4x256xf32>
    %10 = arith.mulf %7, %9 : vector<4x256xf32>
    %c4 = arith.constant 4 : index
    %c0_7 = arith.constant 0 : index
    %11 = vector.load %arg10[%c4, %c0_7] : memref<36x256xf32, #tpu.memory_space<vmem>>, vector<4x256xf32>
    tpu.vector_store %arg10[%c4, %c0_7], %10 {strides = array<i32>} : memref<36x256xf32, #tpu.memory_space<vmem>>, vector<4x256xf32>,
    %c15_i32 = arith.constant 15 : i32
    %12 = tpu.dynamic_rotate %1 by %c15_i32 dim 1 : vector<4x256xf32>, i32 -> vector<4x256xf32>
    %c2 = arith.constant 2 : index
    %c0_8 = arith.constant 0 : index
    %13 = vector.load %arg8[%c2, %c0_8] : memref<9x256xf32, #tpu.memory_space<vmem>>, vector<1x256xf32>
    %14 = vector.broadcast %13 : vector<1x256xf32> to vector<4x256xf32>
    %15 = arith.mulf %12, %14 : vector<4x256xf32>
    %c8 = arith.constant 8 : index
    %c0_9 = arith.constant 0 : index
    %16 = vector.load %arg10[%c8, %c0_9] : memref<36x256xf32, #tpu.memory_space<vmem>>, vector<4x256xf32>
    tpu.vector_store %arg10[%c8, %c0_9], %15 {strides = array<i32>} : memref<36x256xf32, #tpu.memory_space<vmem>>, vector<4x256xf32>,
    %c1_i32 = arith.constant 1 : i32
    %17 = tpu.dynamic_rotate %1 by %c1_i32 dim 1 : vector<4x256xf32>, i32 -> vector<4x256xf32>
    %c3 = arith.constant 3 : index
    %c0_10 = arith.constant 0 : index
    %18 = vector.load %arg8[%c3, %c0_10] : memref<9x256xf32, #tpu.memory_space<vmem>>, vector<1x256xf32>
    %19 = vector.broadcast %18 : vector<1x256xf32> to vector<4x256xf32>
    %20 = arith.mulf %17, %19 : vector<4x256xf32>
    %c12 = arith.constant 12 : index
    %c0_11 = arith.constant 0 : index
    %21 = vector.load %arg10[%c12, %c0_11] : memref<36x256xf32, #tpu.memory_space<vmem>>, vector<4x256xf32>
    tpu.vector_store %arg10[%c12, %c0_11], %20 {strides = array<i32>} : memref<36x256xf32, #tpu.memory_space<vmem>>, vector<4x256xf32>,
    %c16 = arith.constant 16 : index
    %c0_12 = arith.constant 0 : index
    %22 = vector.load %arg10[%c16, %c0_12] : memref<36x256xf32, #tpu.memory_space<vmem>>, vector<4x256xf32>
    tpu.vector_store %arg10[%c16, %c0_12], %1 {strides = array<i32>} : memref<36x256xf32, #tpu.memory_space<vmem>>, vector<4x256xf32>,
    %c255_i32 = arith.constant 255 : i32
    %23 = tpu.dynamic_rotate %1 by %c255_i32 dim 1 : vector<4x256xf32>, i32 -> vector<4x256xf32>
    %c5 = arith.constant 5 : index
    %c0_13 = arith.constant 0 : index
    %24 = vector.load %arg8[%c5, %c0_13] : memref<9x256xf32, #tpu.memory_space<vmem>>, vector<1x256xf32>
    %25 = vector.broadcast %24 : vector<1x256xf32> to vector<4x256xf32>
    %26 = arith.mulf %23, %25 : vector<4x256xf32>
    %c20 = arith.constant 20 : index
    %c0_14 = arith.constant 0 : index
    %27 = vector.load %arg10[%c20, %c0_14] : memref<36x256xf32, #tpu.memory_space<vmem>>, vector<4x256xf32>
    tpu.vector_store %arg10[%c20, %c0_14], %26 {strides = array<i32>} : memref<36x256xf32, #tpu.memory_space<vmem>>, vector<4x256xf32>,
    %c241_i32 = arith.constant 241 : i32
    %28 = tpu.dynamic_rotate %1 by %c241_i32 dim 1 : vector<4x256xf32>, i32 -> vector<4x256xf32>
    %c6 = arith.constant 6 : index
    %c0_15 = arith.constant 0 : index
    %29 = vector.load %arg8[%c6, %c0_15] : memref<9x256xf32, #tpu.memory_space<vmem>>, vector<1x256xf32>
    %30 = vector.broadcast %29 : vector<1x256xf32> to vector<4x256xf32>
    %31 = arith.mulf %28, %30 : vector<4x256xf32>
    %c24 = arith.constant 24 : index
    %c0_16 = arith.constant 0 : index
    %32 = vector.load %arg10[%c24, %c0_16] : memref<36x256xf32, #tpu.memory_space<vmem>>, vector<4x256xf32>
    tpu.vector_store %arg10[%c24, %c0_16], %31 {strides = array<i32>} : memref<36x256xf32, #tpu.memory_space<vmem>>, vector<4x256xf32>,
    %c240_i32 = arith.constant 240 : i32
    %33 = tpu.dynamic_rotate %1 by %c240_i32 dim 1 : vector<4x256xf32>, i32 -> vector<4x256xf32>
    %c7 = arith.constant 7 : index
    %c0_17 = arith.constant 0 : index
    %34 = vector.load %arg8[%c7, %c0_17] : memref<9x256xf32, #tpu.memory_space<vmem>>, vector<1x256xf32>
    %35 = vector.broadcast %34 : vector<1x256xf32> to vector<4x256xf32>
    %36 = arith.mulf %33, %35 : vector<4x256xf32>
    %c28 = arith.constant 28 : index
    %c0_18 = arith.constant 0 : index
    %37 = vector.load %arg10[%c28, %c0_18] : memref<36x256xf32, #tpu.memory_space<vmem>>, vector<4x256xf32>
    tpu.vector_store %arg10[%c28, %c0_18], %36 {strides = array<i32>} : memref<36x256xf32, #tpu.memory_space<vmem>>, vector<4x256xf32>,
    %c239_i32 = arith.constant 239 : i32
    %38 = tpu.dynamic_rotate %1 by %c239_i32 dim 1 : vector<4x256xf32>, i32 -> vector<4x256xf32>
    %c8_19 = arith.constant 8 : index
    %c0_20 = arith.constant 0 : index
    %39 = vector.load %arg8[%c8_19, %c0_20] : memref<9x256xf32, #tpu.memory_space<vmem>>, vector<1x256xf32>
    %40 = vector.broadcast %39 : vector<1x256xf32> to vector<4x256xf32>
    %41 = arith.mulf %38, %40 : vector<4x256xf32>
    %c32 = arith.constant 32 : index
    %c0_21 = arith.constant 0 : index
    %42 = vector.load %arg10[%c32, %c0_21] : memref<36x256xf32, #tpu.memory_space<vmem>>, vector<4x256xf32>
    tpu.vector_store %arg10[%c32, %c0_21], %41 {strides = array<i32>} : memref<36x256xf32, #tpu.memory_space<vmem>>, vector<4x256xf32>,
    %c0_22 = arith.constant 0 : index
    %c0_23 = arith.constant 0 : index
    %43 = vector.load %arg2[%c0_22, %c0_23] : memref<4x36xf32, #tpu.memory_space<vmem>>, vector<4x36xf32>
    %c0_24 = arith.constant 0 : index
    %c0_25 = arith.constant 0 : index
    %44 = vector.load %arg10[%c0_24, %c0_25] : memref<36x256xf32, #tpu.memory_space<vmem>>, vector<36x256xf32>
    %cst = arith.constant dense<0.000000e+00> : vector<4x256xf32>
    %45 = tpu.matmul %43, %44, %cst {dimension_numbers = #tpu.dot_dimension_numbers<[1], [0], [0], [1], [0, 0, 1, 1], [], []>} : vector<4x36xf32>, vector<36x256xf32>, vector<4x256xf32> -> vector<4x256xf32>
    %c0_26 = arith.constant 0 : index
    %c0_27 = arith.constant 0 : index
    %46 = vector.load %arg3[%c0_26, %c0_27] : memref<4x1xf32, #tpu.memory_space<vmem>>, vector<4x1xf32>
    %47 = vector.broadcast %46 : vector<4x1xf32> to vector<4x256xf32>
    %48 = arith.mulf %45, %47 : vector<4x256xf32>
    %c0_28 = arith.constant 0 : index
    %c0_29 = arith.constant 0 : index
    %49 = vector.load %arg4[%c0_28, %c0_29] : memref<4x1xf32, #tpu.memory_space<vmem>>, vector<4x1xf32>
    %50 = vector.broadcast %49 : vector<4x1xf32> to vector<4x256xf32>
    %51 = arith.addf %48, %50 : vector<4x256xf32>
    %cst_30 = arith.constant 0.000000e+00 : f32
    %52 = vector.broadcast %cst_30 : f32 to vector<4x256xf32>
    %53 = arith.maximumf %51, %52 : vector<4x256xf32>
    %c17_i32_31 = arith.constant 17 : i32
    %54 = tpu.dynamic_rotate %53 by %c17_i32_31 dim 1 : vector<4x256xf32>, i32 -> vector<4x256xf32>
    %c0_32 = arith.constant 0 : index
    %c0_33 = arith.constant 0 : index
    %55 = vector.load %arg8[%c0_32, %c0_33] : memref<9x256xf32, #tpu.memory_space<vmem>>, vector<1x256xf32>
    %56 = vector.broadcast %55 : vector<1x256xf32> to vector<4x256xf32>
    %57 = arith.mulf %54, %56 : vector<4x256xf32>
    %c0_34 = arith.constant 0 : index
    %c0_35 = arith.constant 0 : index
    %58 = vector.load %arg10[%c0_34, %c0_35] : memref<36x256xf32, #tpu.memory_space<vmem>>, vector<4x256xf32>
    tpu.vector_store %arg10[%c0_34, %c0_35], %57 {strides = array<i32>} : memref<36x256xf32, #tpu.memory_space<vmem>>, vector<4x256xf32>,
    %c16_i32_36 = arith.constant 16 : i32
    %59 = tpu.dynamic_rotate %53 by %c16_i32_36 dim 1 : vector<4x256xf32>, i32 -> vector<4x256xf32>
    %c1_37 = arith.constant 1 : index
    %c0_38 = arith.constant 0 : index
    %60 = vector.load %arg8[%c1_37, %c0_38] : memref<9x256xf32, #tpu.memory_space<vmem>>, vector<1x256xf32>
    %61 = vector.broadcast %60 : vector<1x256xf32> to vector<4x256xf32>
    %62 = arith.mulf %59, %61 : vector<4x256xf32>
    %c4_39 = arith.constant 4 : index
    %c0_40 = arith.constant 0 : index
    %63 = vector.load %arg10[%c4_39, %c0_40] : memref<36x256xf32, #tpu.memory_space<vmem>>, vector<4x256xf32>
    tpu.vector_store %arg10[%c4_39, %c0_40], %62 {strides = array<i32>} : memref<36x256xf32, #tpu.memory_space<vmem>>, vector<4x256xf32>,
    %c15_i32_41 = arith.constant 15 : i32
    %64 = tpu.dynamic_rotate %53 by %c15_i32_41 dim 1 : vector<4x256xf32>, i32 -> vector<4x256xf32>
    %c2_42 = arith.constant 2 : index
    %c0_43 = arith.constant 0 : index
    %65 = vector.load %arg8[%c2_42, %c0_43] : memref<9x256xf32, #tpu.memory_space<vmem>>, vector<1x256xf32>
    %66 = vector.broadcast %65 : vector<1x256xf32> to vector<4x256xf32>
    %67 = arith.mulf %64, %66 : vector<4x256xf32>
    %c8_44 = arith.constant 8 : index
    %c0_45 = arith.constant 0 : index
    %68 = vector.load %arg10[%c8_44, %c0_45] : memref<36x256xf32, #tpu.memory_space<vmem>>, vector<4x256xf32>
    tpu.vector_store %arg10[%c8_44, %c0_45], %67 {strides = array<i32>} : memref<36x256xf32, #tpu.memory_space<vmem>>, vector<4x256xf32>,
    %c1_i32_46 = arith.constant 1 : i32
    %69 = tpu.dynamic_rotate %53 by %c1_i32_46 dim 1 : vector<4x256xf32>, i32 -> vector<4x256xf32>
    %c3_47 = arith.constant 3 : index
    %c0_48 = arith.constant 0 : index
    %70 = vector.load %arg8[%c3_47, %c0_48] : memref<9x256xf32, #tpu.memory_space<vmem>>, vector<1x256xf32>
    %71 = vector.broadcast %70 : vector<1x256xf32> to vector<4x256xf32>
    %72 = arith.mulf %69, %71 : vector<4x256xf32>
    %c12_49 = arith.constant 12 : index
    %c0_50 = arith.constant 0 : index
    %73 = vector.load %arg10[%c12_49, %c0_50] : memref<36x256xf32, #tpu.memory_space<vmem>>, vector<4x256xf32>
    tpu.vector_store %arg10[%c12_49, %c0_50], %72 {strides = array<i32>} : memref<36x256xf32, #tpu.memory_space<vmem>>, vector<4x256xf32>,
    %c16_51 = arith.constant 16 : index
    %c0_52 = arith.constant 0 : index
    %74 = vector.load %arg10[%c16_51, %c0_52] : memref<36x256xf32, #tpu.memory_space<vmem>>, vector<4x256xf32>
    tpu.vector_store %arg10[%c16_51, %c0_52], %53 {strides = array<i32>} : memref<36x256xf32, #tpu.memory_space<vmem>>, vector<4x256xf32>,
    %c255_i32_53 = arith.constant 255 : i32
    %75 = tpu.dynamic_rotate %53 by %c255_i32_53 dim 1 : vector<4x256xf32>, i32 -> vector<4x256xf32>
    %c5_54 = arith.constant 5 : index
    %c0_55 = arith.constant 0 : index
    %76 = vector.load %arg8[%c5_54, %c0_55] : memref<9x256xf32, #tpu.memory_space<vmem>>, vector<1x256xf32>
    %77 = vector.broadcast %76 : vector<1x256xf32> to vector<4x256xf32>
    %78 = arith.mulf %75, %77 : vector<4x256xf32>
    %c20_56 = arith.constant 20 : index
    %c0_57 = arith.constant 0 : index
    %79 = vector.load %arg10[%c20_56, %c0_57] : memref<36x256xf32, #tpu.memory_space<vmem>>, vector<4x256xf32>
    tpu.vector_store %arg10[%c20_56, %c0_57], %78 {strides = array<i32>} : memref<36x256xf32, #tpu.memory_space<vmem>>, vector<4x256xf32>,
    %c241_i32_58 = arith.constant 241 : i32
    %80 = tpu.dynamic_rotate %53 by %c241_i32_58 dim 1 : vector<4x256xf32>, i32 -> vector<4x256xf32>
    %c6_59 = arith.constant 6 : index
    %c0_60 = arith.constant 0 : index
    %81 = vector.load %arg8[%c6_59, %c0_60] : memref<9x256xf32, #tpu.memory_space<vmem>>, vector<1x256xf32>
    %82 = vector.broadcast %81 : vector<1x256xf32> to vector<4x256xf32>
    %83 = arith.mulf %80, %82 : vector<4x256xf32>
    %c24_61 = arith.constant 24 : index
    %c0_62 = arith.constant 0 : index
    %84 = vector.load %arg10[%c24_61, %c0_62] : memref<36x256xf32, #tpu.memory_space<vmem>>, vector<4x256xf32>
    tpu.vector_store %arg10[%c24_61, %c0_62], %83 {strides = array<i32>} : memref<36x256xf32, #tpu.memory_space<vmem>>, vector<4x256xf32>,
    %c240_i32_63 = arith.constant 240 : i32
    %85 = tpu.dynamic_rotate %53 by %c240_i32_63 dim 1 : vector<4x256xf32>, i32 -> vector<4x256xf32>
    %c7_64 = arith.constant 7 : index
    %c0_65 = arith.constant 0 : index
    %86 = vector.load %arg8[%c7_64, %c0_65] : memref<9x256xf32, #tpu.memory_space<vmem>>, vector<1x256xf32>
    %87 = vector.broadcast %86 : vector<1x256xf32> to vector<4x256xf32>
    %88 = arith.mulf %85, %87 : vector<4x256xf32>
    %c28_66 = arith.constant 28 : index
    %c0_67 = arith.constant 0 : index
    %89 = vector.load %arg10[%c28_66, %c0_67] : memref<36x256xf32, #tpu.memory_space<vmem>>, vector<4x256xf32>
    tpu.vector_store %arg10[%c28_66, %c0_67], %88 {strides = array<i32>} : memref<36x256xf32, #tpu.memory_space<vmem>>, vector<4x256xf32>,
    %c239_i32_68 = arith.constant 239 : i32
    %90 = tpu.dynamic_rotate %53 by %c239_i32_68 dim 1 : vector<4x256xf32>, i32 -> vector<4x256xf32>
    %c8_69 = arith.constant 8 : index
    %c0_70 = arith.constant 0 : index
    %91 = vector.load %arg8[%c8_69, %c0_70] : memref<9x256xf32, #tpu.memory_space<vmem>>, vector<1x256xf32>
    %92 = vector.broadcast %91 : vector<1x256xf32> to vector<4x256xf32>
    %93 = arith.mulf %90, %92 : vector<4x256xf32>
    %c32_71 = arith.constant 32 : index
    %c0_72 = arith.constant 0 : index
    %94 = vector.load %arg10[%c32_71, %c0_72] : memref<36x256xf32, #tpu.memory_space<vmem>>, vector<4x256xf32>
    tpu.vector_store %arg10[%c32_71, %c0_72], %93 {strides = array<i32>} : memref<36x256xf32, #tpu.memory_space<vmem>>, vector<4x256xf32>,
    %c0_73 = arith.constant 0 : index
    %c0_74 = arith.constant 0 : index
    %95 = vector.load %arg5[%c0_73, %c0_74] : memref<4x36xf32, #tpu.memory_space<vmem>>, vector<4x36xf32>
    %c0_75 = arith.constant 0 : index
    %c0_76 = arith.constant 0 : index
    %96 = vector.load %arg10[%c0_75, %c0_76] : memref<36x256xf32, #tpu.memory_space<vmem>>, vector<36x256xf32>
    %cst_77 = arith.constant dense<0.000000e+00> : vector<4x256xf32>
    %97 = tpu.matmul %95, %96, %cst_77 {dimension_numbers = #tpu.dot_dimension_numbers<[1], [0], [0], [1], [0, 0, 1, 1], [], []>} : vector<4x36xf32>, vector<36x256xf32>, vector<4x256xf32> -> vector<4x256xf32>
    %c0_78 = arith.constant 0 : index
    %c0_79 = arith.constant 0 : index
    %98 = vector.load %arg6[%c0_78, %c0_79] : memref<4x1xf32, #tpu.memory_space<vmem>>, vector<4x1xf32>
    %99 = vector.broadcast %98 : vector<4x1xf32> to vector<4x256xf32>
    %100 = arith.mulf %97, %99 : vector<4x256xf32>
    %c0_80 = arith.constant 0 : index
    %c0_81 = arith.constant 0 : index
    %101 = vector.load %arg7[%c0_80, %c0_81] : memref<4x1xf32, #tpu.memory_space<vmem>>, vector<4x1xf32>
    %102 = vector.broadcast %101 : vector<4x1xf32> to vector<4x256xf32>
    %103 = arith.addf %100, %102 : vector<4x256xf32>
    %104 = arith.addf %103, %1 : vector<4x256xf32>
    %c0_82 = arith.constant 0 : index
    %c0_83 = arith.constant 0 : index
    %c0_84 = arith.constant 0 : index
    %105 = vector.load %arg9[%c0_82, %c0_83, %c0_84] : memref<1x4x256xf32, #tpu.memory_space<vmem>>, vector<1x4x256xf32>
    %106 = vector.shape_cast %105 : vector<1x4x256xf32> to vector<4x256xf32>
    %107 = vector.shape_cast %104 : vector<4x256xf32> to vector<1x4x256xf32>
    tpu.vector_store %arg9[%c0_82, %c0_83, %c0_84], %107 {strides = array<i32>} : memref<1x4x256xf32, #tpu.memory_space<vmem>>, vector<1x4x256xf32>,
    return
  }
  func.func @transform_0(%arg0: i32) -> (i32, i32, i32) {
    %c0_i32 = arith.constant 0 : i32
    %c0_i32_0 = arith.constant 0 : i32
    %c0_i32_1 = arith.constant 0 : i32
    return %arg0, %c0_i32, %c0_i32_0 : i32, i32, i32
  }
  func.func @transform_1(%arg0: i32) -> (i32, i32) {
    %c0_i32 = arith.constant 0 : i32
    %c0_i32_0 = arith.constant 0 : i32
    %c0_i32_1 = arith.constant 0 : i32
    return %c0_i32, %c0_i32_0 : i32, i32
  }
  func.func @transform_2(%arg0: i32) -> (i32, i32) {
    %c0_i32 = arith.constant 0 : i32
    %c0_i32_0 = arith.constant 0 : i32
    %c0_i32_1 = arith.constant 0 : i32
    return %c0_i32, %c0_i32_0 : i32, i32
  }
  func.func @transform_3(%arg0: i32) -> (i32, i32) {
    %c0_i32 = arith.constant 0 : i32
    %c0_i32_0 = arith.constant 0 : i32
    %c0_i32_1 = arith.constant 0 : i32
    return %c0_i32, %c0_i32_0 : i32, i32
  }
  func.func @transform_4(%arg0: i32) -> (i32, i32) {
    %c0_i32 = arith.constant 0 : i32
    %c0_i32_0 = arith.constant 0 : i32
    %c0_i32_1 = arith.constant 0 : i32
    return %c0_i32, %c0_i32_0 : i32, i32
  }
  func.func @transform_5(%arg0: i32) -> (i32, i32) {
    %c0_i32 = arith.constant 0 : i32
    %c0_i32_0 = arith.constant 0 : i32
    %c0_i32_1 = arith.constant 0 : i32
    return %c0_i32, %c0_i32_0 : i32, i32
  }
  func.func @transform_6(%arg0: i32) -> (i32, i32) {
    %c0_i32 = arith.constant 0 : i32
    %c0_i32_0 = arith.constant 0 : i32
    %c0_i32_1 = arith.constant 0 : i32
    return %c0_i32, %c0_i32_0 : i32, i32
  }
  func.func @transform_7(%arg0: i32) -> (i32, i32) {
    %c0_i32 = arith.constant 0 : i32
    %c0_i32_0 = arith.constant 0 : i32
    %c0_i32_1 = arith.constant 0 : i32
    return %c0_i32, %c0_i32_0 : i32, i32
  }
  func.func @transform_8(%arg0: i32) -> (i32, i32, i32) {
    %c0_i32 = arith.constant 0 : i32
    %c0_i32_0 = arith.constant 0 : i32
    %c0_i32_1 = arith.constant 0 : i32
    return %arg0, %c0_i32, %c0_i32_0 : i32, i32, i32
  }
}

</mosaic_0001>

<bundles_post_ra>
// kernel: tpu_custom_call.1
= control target key start
LH: loop header
LB: loop body
LE: loop exit
PB: predicated region body
PF: predicated region fallthrough
CT: control target
= control target key end

     0   :  { %13 = vsyncpa [#allocation4], 0  ;;  %s1728_s0 = inlined_call_operand.hbm [shape: f32[2,4,256], index: 0, kind: input, shape index: {}]   ;;  %s1729_s1 = inlined_call_operand.vmem [shape: f32[4,36], index: 1, kind: input, shape index: {}]   ;;  %s1730_s2 = inlined_call_operand.vmem [shape: f32[4,1], index: 2, kind: input, shape index: {}]   ;;  %s1731_s3 = inlined_call_operand.vmem [shape: f32[4,1], index: 3, kind: input, shape index: {}]   ;;  %s1732_s4 = inlined_call_operand.vmem [shape: f32[4,36], index: 4, kind: input, shape index: {}]   ;;  %s1733_s5 = inlined_call_operand.vmem [shape: f32[4,1], index: 5, kind: input, shape index: {}]   ;;  %s1734_s6 = inlined_call_operand.vmem [shape: f32[4,1], index: 6, kind: input, shape index: {}]   ;;  %s1735_s7 = inlined_call_operand.vmem [shape: f32[9,256], index: 7, kind: input, shape index: {}]   ;;  %s1736_s8 = inlined_call_operand.hbm [shape: f32[2,4,256], index: 8, kind: output, shape index: {}]  }
   0x1   :  { %15 = vsyncpa [#allocation4 + $0x1], 0 }
   0x2   :  { %16 = vsyncpa [#allocation5], 0 }
   0x3   :  { %18 = vsyncpa [#allocation5 + $0x1], 0  ;;  %s1323_s27 = smov 0   ;;  %s1325_s28 = smov 0  }
   0x4   :  { %s1327_s29 = smov 0   ;;  %s1329_s30 = smov 0  }
   0x5 LB: > { %s1344_s9 = sadd.s32 4294967295, %s1264_s30   ;;  %s1057_s10 = sadd.s32 4294967294, %s1264_s30   ;;  %s1264_s30 = sphi %s1329_s30, %s1759_s30   ;;  %s1260_s29 = sphi %s1327_s29, %s1758_s29   ;;  %s1256_s28 = sphi %s1325_s28, %s1757_s28   ;;  %s1252_s27 = sphi %s1323_s27, %s1756_s27  }
   0x6   : > { %s1348_s11 = sadd.s32 1, %s1264_s30   ;;  %s31_s12 = sadd.s32 1, %s1260_s29 }
   0x7   : > { %s28_s13 = ssub.s32 %s1264_s30, %s1348_s11  ;;  %p38_p0 = scmp.ne.s32.totalorder %s1260_s29, %s1256_s28 }
   0x8   : > { %p29_p1 = scmp.eq.s32.totalorder %s28_s13, 0  ;;  %p39_p2 = scmp.eq.s32.totalorder %s1264_s30, 0 }
   0x9   : > { %p44_p3 = scmp.ne.s32.totalorder %s1256_s28, %s1252_s27  ;;  %p45_p4 = scmp.eq.s32.totalorder %s1344_s9, 0 }
   0xa   : > { %s1360_s14 = scalar_select %p29_p1, %s1260_s29, %s31_s12  }
   0xb   : > { %p1362_p5 = por %p39_p2, %p38_p0  ;;  %p1366_p6 = por %p45_p4, %p44_p3 }
   0xc   : > { %p215_p7 = scmp.eq.s32.totalorder %s1344_s9, 1  ;;  %p221_p8 = scmp.eq.s32.totalorder %s1057_s10, 1 }
   0xd   : > { %p1121_p10 = scmp.lt.s32.totalorder %s1264_s30, 2  ;;  %s262_s19 = sand.u32 1, %s1260_s29  }
   0xe   : > { %p1373_p11 = por %p215_p7, %p38_p0  ;;  %p1377_p12 = por %p221_p8, %p44_p3 }
   0xf   : > { %s1091_s20 = sshll.u32 %s1264_s30, 7  ;;  %s1060_s21 = sshll.u32 %s262_s19, 3 }
  0x10   : > { %s1745_s17 = scalar_select %p1373_p11, 1, 0 }
  0x11   : > { %s1746_s18 = scalar_select %p1377_p12, 1, 0 }
  0x12   : > { %s1386_s24 = scalar_lea.hbm %s1728_s0, %s1091_s20  ;;  %s266_s25 = scalar_lea.vmem [#allocation3], %s1060_s21 }
  0x13   : > { %s274_s26 = sshll.u32 %s266_s25, 4  ;;  %p1390_p13 = pnand %p1121_p10, %p1362_p5  ;;  %s1394_s26 = int_to_ptr.vmem [resolvable:$true] %s274_s26 }
  0x14   : > { %s263_s12 = scalar_lea.sflag [#allocation4], %s262_s19  ;;  %s1168_s13 = scalar_lea.hbm %s1386_s24, 128 }
  0x15   : > { %p1169_p2 = scmp.ne.s32.totalorder %s1386_s24, %s1168_s13  ;;  %p1170_p3 = pneg %p1390_p13 }
  0x16   : > { %s1173_s21 = scalar_lea.hbm %s1728_s0, 256  ;;  %p1174_p5 = scmp.lt.u32.totalorder %s1386_s24, %s1728_s0 }
  0x17   : > { %p1171_p4 = pnand %p1170_p3, %p1169_p2  ;;  %p1175_p8 = scmp.lt.u32.totalorder %s1173_s21, %s1168_s13 }
  0x18   : > { %p1177_p9 = scmp.lt.u32.totalorder %s1168_s13, %s1386_s24 }
  0x19   : > { %p1172_p7 = pneg %p1171_p4  ;;  %p1176_p10 = por %p1175_p8, %p1174_p5 }
  0x1b   : > { %p1178_p0 = por %p1177_p9, %p1176_p10 }
  0x1d   : > { %p1179_p1 = pnand %p1178_p0, %p1172_p7 }
  0x1f   : > { %1182 = shalt.err (!%p1179_p1)
}
  0x20   : > { %s1183_s19 = scalar_lea.vmem %s1394_s26, 128  ;;  %s1266_s25 = smov [#allocation3]  }
  0x21   : > { %p1184_p2 = scmp.ne.s32.totalorder %s1394_s26, %s1183_s19  ;;  %s1188_s15 = sshll.u32 %s1266_s25, 4  ;;  %s1189_s15 = int_to_ptr.vmem [resolvable:$false] %s1188_s15 }
  0x22   : > { %s1190_s20 = scalar_lea.vmem %s1189_s15, 256  ;;  %p1191_p11 = scmp.lt.s32.totalorder %s1394_s26, %s1189_s15 }
  0x23   : > { %p1186_p4 = pnand %p1184_p2, %p1170_p3  ;;  %p1192_p5 = scmp.lt.s32.totalorder %s1190_s20, %s1183_s19 }
  0x25   : > { %p1187_p12 = pneg %p1186_p4  ;;  %p1193_p8 = por %p1192_p5, %p1191_p11 }
  0x27   : > { %p1194_p9 = pnand %p1193_p8, %p1187_p12 }
  0x29   : > { %1197 = shalt.err (!%p1194_p9)
}
  0x2a   : > { %1116 = dma.hbm_to_vmem [thread:$0]  (!%p1390_p13), %s1386_s24, 128, %s1394_s26, %s263_s12  }
  0x2b   : > { %p1748_p0 = scmp.lt.s32.totalorder %s1264_s30, 3  ;;  %p1749_p1 = scmp.ge.s32.totalorder %s1264_s30, 1 }
  0x2d   : > { %p280_p3 = pnand %p1749_p1, %p1748_p0 }
  0x2e   : > { %s1428_s13 = sand.u32 (!%p280_p3), 1, %s1256_s28  }
  0x2f   : > { %283 = sbr.rel (%p280_p3) target bundleno = 826 (0x33a), region = 52  ;;  %s1738_s21 = sshll.u32 (!%p280_p3), %s1428_s13, 3 }
  0x30   : > { %s286_s22 = scalar_lea.sflag (!%p280_p3), [#allocation4], %s1428_s13  ;;  %s289_s10 = scalar_lea.vmem (!%p280_p3), [#allocation3], %s1738_s21 }
  0x36   : > { %1243 = dma.done.wait (%p1366_p6), %s286_s22, 128  }
  0x37   : > { %1245 = vsyncadd (%p1366_p6), %s286_s22, 4294967168  ;;  %v1438_v0 = vld [vmem:[%s289_s10] sm:$0xff]  ;;  %s1267_s24 = smov 1   ;;  %s1268_s26 = smov 16   ;;  %v1275_v2 = vmov 0.0   ;;  %v1276_v5 = vmov 0   ;;  %v330_v6 = vlaneseq }
  0x38   : > { %405 = vrot.lane.b32.xlu1 %v1438_v0, %s1267_s24  ;;  %435 = vst [vmem:[#allocation2 + $0x20] sm:$0xf] %v1438_v0  ;;  %351 = vrot.lane.b32.xlu0 %v1438_v0, %s1268_s26  ;;  %v1447_v1 = vcombine.high %v1438_v0, %v1438_v0  ;;  %s1269_s16 = smov 17   ;;  %s1270_s12 = smov 15   ;;  %v638_v3 = vld [vmem:[%s1730_s2] sm:$0xf] }
  0x39   : > { %s1271_s23 = smov 127   ;;  %s1272_s19 = smov 112   ;;  %631 = vmatprep.mubr.f32.mxu0 %v1275_v2  ;;  %942 = vmatprep.mubr.f32.mxu1 %v1275_v2  ;;  %v646_v4 = vld [vmem:[%s1731_s3] sm:$0xf]  ;;  %v338_v7 = vshrl.u32 %v330_v6, 7  ;;  %v1484_v8 = vand.u32 127, %v330_v6 }
  0x3a   : > { %436 = vst [vmem:[#allocation2 + $0x28] sm:$0xf] %v1447_v1  ;;  %s1741_s25 = smov 113   ;;  %s1739_s15 = smov 111   ;;  %1165 = vset.pattern.permute.xlu0 %v1276_v5  ;;  %1166 = vset.pattern.permute.xlu1 %v1276_v5  ;;  %vm560_vm8 = vcmask 1043456   ;;  %vm556_vm9 = vcmask 293888  }
  0x3b   : > { %v1486_v9 = vsub.s32 0, %v338_v7  ;;  %v1488_v10 = vsub.s32 1, %v338_v7  ;;  %v1068_v11 = vld [vmem:[%s1735_s7 + $0x3] ss:$8 sm:$0x3]  ;;  %vm409_vm0 = vcmp.lt.s32.totalorder %v1484_v8, 1 }
  0x3c   : > { %326 = vrot.lane.b32.xlu0 %v1438_v0, %s1269_s16  ;;  %407 = vrot.lane.b32.xlu1 %v1447_v1, %s1267_s24  ;;  %v335_v16 = vld [vmem:[%s1735_s7] ss:$8 sm:$0x3]  ;;  %v1066_v17 = vld [vmem:[%s1735_s7 + $0x1] ss:$8 sm:$0x3] }
  0x3d   : > { %v418_v14 = vrot.slane %v1068_v11, %v1486_v9  ;;  %v422_v15 = vrot.slane %v1068_v11, %v1488_v10  ;;  %vm332_vm1 = vcmp.lt.s32.totalorder %v1484_v8, 17  ;;  %vm355_vm2 = vcmp.lt.s32.totalorder %v1484_v8, 16  ;;  %v1067_v24 = vld [vmem:[%s1735_s7 + $0x2] ss:$8 sm:$0x3]  ;;  %p1753_p11 = scmp.ne.s32.totalorder %s1745_s17, 0 }
  0x3e   : > { %v340_v22 = vrot.slane %v335_v16, %v1486_v9  ;;  %v344_v23 = vrot.slane %v335_v16, %v1488_v10  ;;  %v364_v27 = vrot.slane %v1066_v17, %v1486_v9  ;;  %v368_v28 = vrot.slane %v1066_v17, %v1488_v10  ;;  %v1069_v43 = vld [vmem:[%s1735_s7 + $0x5] ss:$8 sm:$0x3]  ;;  %v1071_v54 = vld [vmem:[%s1735_s7 + $0x7] ss:$8 sm:$0x3] }
  0x3f   : > { %vm385_vm3 = vcmp.lt.s32.totalorder %v1484_v8, 15  ;;  %v394_v33 = vrot.slane %v1067_v24, %v1486_v9  ;;  %v398_v34 = vrot.slane %v1067_v24, %v1488_v10  ;;  %vm441_vm4 = vcmp.lt.s32.totalorder %v1484_v8, 127  ;;  %v1070_v63 = vld [vmem:[%s1735_s7 + $0x6] ss:$8 sm:$0x3] }
  0x40   : > { %328 = vrot.lane.b32.xlu1 %v1447_v1, %s1269_s16  ;;  %353 = vrot.lane.b32.xlu0 %v1447_v1, %s1268_s26  ;;  %v450_v52 = vrot.slane %v1069_v43, %v1486_v9  ;;  %v454_v53 = vrot.slane %v1069_v43, %v1488_v10  ;;  %vm495_vm5 = vcmp.lt.s32.totalorder %v1484_v8, 112  ;;  %v504_v61 = vrot.slane %v1071_v54, %v1486_v9  ;;  %v1072_v16 = vld [vmem:[%s1735_s7 + $0x10] ss:$8 sm:$0x3] }
  0x41   : > { %v508_v62 = vrot.slane %v1071_v54, %v1488_v10  ;;  %vm471_vm6 = vcmp.lt.s32.totalorder %v1484_v8, 113  ;;  %vm525_vm7 = vcmp.lt.s32.totalorder %v1484_v8, 111  ;;  %v858_v8 = vld [vmem:[%s1732_s4] sm:$0xf] }
  0x44   : > { %383 = vrot.lane.b32.xlu1 %v1447_v1, %s1270_s12  ;;  %381 = vrot.lane.b32.xlu0 %v1438_v0, %s1270_s12 }
  0x48   : > { %439 = vrot.lane.b32.xlu1 %v1447_v1, %s1271_s23  ;;  %437 = vrot.lane.b32.xlu0 %v1438_v0, %s1271_s23 }
  0x4c   : > { %493 = vrot.lane.b32.xlu1 %v1447_v1, %s1272_s19  ;;  %491 = vrot.lane.b32.xlu0 %v1438_v0, %s1272_s19 }
  0x50   : > { %469 = vrot.lane.b32.xlu1 %v1447_v1, %s1741_s25  ;;  %467 = vrot.lane.b32.xlu0 %v1438_v0, %s1741_s25 }
  0x54   : > { %523 = vrot.lane.b32.xlu1 %v1447_v1, %s1739_s15  ;;  %521 = vrot.lane.b32.xlu0 %v1438_v0, %s1739_s15 }
  0x58   : > { %641 = vperm.xlu0 %1165, %v638_v3   ;;  %649 = vperm.xlu1 %1166, %v646_v4  }
  0xaa   : > { %v406_v12 = vpop.permute.xlu1 %405  ;;  %v352_v13 = vpop.permute.xlu0 %351 }
  0xae   : > { %v327_v18 = vpop.permute.xlu0 %326  ;;  %v408_v19 = vpop.permute.xlu1 %407 }
  0xaf   : > { %v410_v20 = vsel %vm409_vm0, %v406_v12, %v408_v19  ;;  %v411_v21 = vsel %vm409_vm0, %v408_v19, %v406_v12 }
  0xb0   : > { %v425_v25 = vmul.f32 %v418_v14, %v411_v21  ;;  %v426_v26 = vmul.f32 %v422_v15, %v410_v20  ;;  %v484_v14 = vrot.slane %v1070_v63, %v1488_v10 }
  0xb2   : > { %v429_v29 = vrot.slane %v425_v25, 4  ;;  %v430_v30 = vrot.slane %v426_v26, 4  ;;  %v329_v31 = vpop.permute.xlu1 %328  ;;  %v354_v32 = vpop.permute.xlu0 %353 }
  0xb3   : > { %v333_v35 = vsel %vm332_vm1, %v327_v18, %v329_v31  ;;  %v334_v36 = vsel %vm332_vm1, %v329_v31, %v327_v18  ;;  %v356_v37 = vsel %vm355_vm2, %v352_v13, %v354_v32  ;;  %v357_v38 = vsel %vm355_vm2, %v354_v32, %v352_v13 }
  0xb4   : > { %433 = vst [vmem:[#allocation2 + $0x10] sm:$0xf0] %v429_v29  ;;  %434 = vst [vmem:[#allocation2 + $0x18] sm:$0xf0] %v430_v30  ;;  %v347_v39 = vmul.f32 %v340_v22, %v334_v36  ;;  %v348_v40 = vmul.f32 %v344_v23, %v333_v35  ;;  %v371_v41 = vmul.f32 %v364_v27, %v357_v38 }
  0xb5   : > { %v372_v42 = vmul.f32 %v368_v28, %v356_v37  ;;  %v480_v13 = vrot.slane %v1070_v63, %v1486_v9  ;;  %v534_v30 = vrot.slane %v1072_v16, %v1486_v9  ;;  %v538_v31 = vrot.slane %v1072_v16, %v1488_v10  ;;  %v1078_v63 = vld [vmem:[%s1735_s7 + $0x3] ss:$8 sm:$0x3] }
  0xb6   : > { %349 = vst [vmem:[#allocation2] sm:$0xf] %v347_v39  ;;  %350 = vst [vmem:[#allocation2 + $0x8] sm:$0xf] %v348_v40  ;;  %v375_v44 = vrot.slane %v371_v41, 4  ;;  %v384_v46 = vpop.permute.xlu1 %383  ;;  %v382_v47 = vpop.permute.xlu0 %381 }
  0xb7   : > { %v376_v45 = vrot.slane %v372_v42, 4  ;;  %v386_v48 = vsel %vm385_vm3, %v382_v47, %v384_v46  ;;  %v387_v49 = vsel %vm385_vm3, %v384_v46, %v382_v47  ;;  %v545_v46 = vld [vmem:[%s1729_s1] sm:$0xf] }
  0xb8   : > { %379 = vst [vmem:[#allocation2] sm:$0xf0] %v375_v44  ;;  %v401_v50 = vmul.f32 %v394_v33, %v387_v49  ;;  %v402_v51 = vmul.f32 %v398_v34, %v386_v48 }
  0xb9   : > { %380 = vst [vmem:[#allocation2 + $0x8] sm:$0xf0] %v376_v45 }
  0xba   : > { %403 = vst [vmem:[#allocation2 + $0x10] sm:$0xf] %v401_v50  ;;  %404 = vst [vmem:[#allocation2 + $0x18] sm:$0xf] %v402_v51  ;;  %v440_v55 = vpop.permute.xlu1 %439  ;;  %v438_v56 = vpop.permute.xlu0 %437 }
  0xbb   : > { %v442_v57 = vsel %vm441_vm4, %v438_v56, %v440_v55  ;;  %v443_v58 = vsel %vm441_vm4, %v440_v55, %v438_v56 }
  0xbc   : > { %v457_v59 = vmul.f32 %v450_v52, %v442_v57  ;;  %v458_v60 = vmul.f32 %v454_v53, %v443_v58  ;;  %v949_v57 = vld [vmem:[%s1733_s5] sm:$0xf] }
  0xbd   : > { %v957_v58 = vld [vmem:[%s1734_s6] sm:$0xf] }
  0xbe   : > { %v461_v2 = vrot.slane %v457_v59, 4  ;;  %v462_v3 = vrot.slane %v458_v60, 4  ;;  %v494_v4 = vpop.permute.xlu1 %493  ;;  %v492_v5 = vpop.permute.xlu0 %491  ;;  %v1076_v59 = vld [vmem:[%s1735_s7 + $0x1] ss:$8 sm:$0x3] }
  0xbf   : > { %v496_v6 = vsel %vm495_vm5, %v492_v5, %v494_v4  ;;  %v497_v7 = vsel %vm495_vm5, %v494_v4, %v492_v5  ;;  %v546_v18 = vld [vmem:[#allocation2] sm:$0xff]  ;;  %v689_v60 = vrot.slane %v1076_v59, %v1486_v9 }
  0xc0   : > { %465 = vst [vmem:[#allocation2 + $0x20] sm:$0xf0] %v461_v2  ;;  %466 = vst [vmem:[#allocation2 + $0x28] sm:$0xf0] %v462_v3  ;;  %v511_v11 = vmul.f32 %v504_v61, %v496_v6  ;;  %v512_v12 = vmul.f32 %v508_v62, %v497_v7  ;;  %v547_v15 = vld [vmem:[#allocation2 + $0x8] sm:$0xff]  ;;  %v693_v61 = vrot.slane %v1076_v59, %v1488_v10 }
  0xc1   : > { %v549_v17 = vld [vmem:[#allocation2 + $0x18] sm:$0xff]  ;;  %v548_v19 = vld [vmem:[#allocation2 + $0x10] sm:$0xff]  ;;  %v739_v7 = vrot.slane %v1078_v63, %v1486_v9 }
  0xc2   : > { %v515_v20 = vrot.slane %v511_v11, 4  ;;  %v516_v21 = vrot.slane %v512_v12, 4  ;;  %v470_v22 = vpop.permute.xlu1 %469  ;;  %v468_v23 = vpop.permute.xlu0 %467  ;;  %v1093_v24 = vpack.c.bf16 %v549_v17, %v547_v15  ;;  %v1095_v25 = vpack.c.bf16 %v548_v19, %v546_v18 }
  0xc3   : > { %v472_v26 = vsel %vm471_vm6, %v468_v23, %v470_v22  ;;  %v473_v27 = vsel %vm471_vm6, %v470_v22, %v468_v23  ;;  %v743_v11 = vrot.slane %v1078_v63, %v1488_v10 }
  0xc4   : > { %519 = vst [vmem:[#allocation2 + $0x30] sm:$0xf0] %v515_v20  ;;  %520 = vst [vmem:[#allocation2 + $0x38] sm:$0xf0] %v516_v21  ;;  %v487_v28 = vmul.f32 %v480_v13, %v472_v26  ;;  %v488_v29 = vmul.f32 %v484_v14, %v473_v27  ;;  %1094 = vmatprep.subr.bf16.mxu0 %v1093_v24 }
  0xc5   : > { %1096 = vmatpush1.bf16.msra.mxu0 %v1095_v25  ;;  %v662_v13 = vld [vmem:[%s1735_s7] ss:$8 sm:$0x3]  ;;  %v1077_v24 = vld [vmem:[%s1735_s7 + $0x2] ss:$8 sm:$0x3] }
  0xc6   : > { %489 = vst [vmem:[#allocation2 + $0x30] sm:$0xf] %v487_v28  ;;  %490 = vst [vmem:[#allocation2 + $0x38] sm:$0xf] %v488_v29  ;;  %v524_v32 = vpop.permute.xlu1 %523  ;;  %v522_v33 = vpop.permute.xlu0 %521  ;;  %v667_v21 = vrot.slane %v662_v13, %v1486_v9  ;;  %v671_v22 = vrot.slane %v662_v13, %v1488_v10 }
  0xc7   : > { %v526_v34 = vsel %vm525_vm7, %v522_v33, %v524_v32  ;;  %v527_v35 = vsel %vm525_vm7, %v524_v32, %v522_v33  ;;  %v551_v38 = vld [vmem:[#allocation2 + $0x28] sm:$0xff]  ;;  %v550_v40 = vld [vmem:[#allocation2 + $0x20] sm:$0xff]  ;;  %v717_v32 = vrot.slane %v1077_v24, %v1486_v9  ;;  %v721_v33 = vrot.slane %v1077_v24, %v1488_v10 }
  0xc8   : > { %v541_v36 = vmul.f32 %v534_v30, %v526_v34  ;;  %v542_v37 = vmul.f32 %v538_v31, %v527_v35  ;;  %v1079_v35 = vld [vmem:[%s1735_s7 + $0x5] ss:$8 sm:$0x3] }
  0xca   : > { %543 = vst [vmem:[#allocation2 + $0x40] sm:$0xf] %v541_v36  ;;  %544 = vst [vmem:[#allocation2 + $0x48] sm:$0xf] %v542_v37 }
  0xcd   : > { %v553_v39 = vld [vmem:[#allocation2 + $0x38] sm:$0xff]  ;;  %v552_v41 = vld [vmem:[#allocation2 + $0x30] sm:$0xff] }
  0xce   : > { %v1097_v42 = vpack.c.bf16 %v553_v39, %v551_v38  ;;  %v1099_v43 = vpack.c.bf16 %v552_v41, %v550_v40  ;;  %v769_v41 = vrot.slane %v1079_v35, %v1486_v9 }
  0xd0   : > { %1098 = vmatprep.subr.bf16.mxu0 %v1097_v42  ;;  %v773_v42 = vrot.slane %v1079_v35, %v1488_v10 }
  0xd1   : > { %1100 = vmatpush1.bf16.msra.mxu0 %v1099_v43  ;;  %v555_v44 = vld [vmem:[#allocation2 + $0x48] sm:$0xf]  ;;  %v554_v45 = vld [vmem:[#allocation2 + $0x40] sm:$0xf] }
  0xd2   : > { %1073 = vmatprep.subr.msk.mxu0 %vm560_vm8, %v555_v44  ;;  %v1081_v44 = vld [vmem:[%s1735_s7 + $0x7] ss:$8 sm:$0x3] }
  0xd5   : > { %1074 = vmatpush1.msk.msra.mxu0 %vm560_vm8, %v554_v45 }
  0xd6   : > { %1075 = vmatmul.mubr.msk.f32.vlgmr.msra.gmra.mrb[0].mxu0 %vm556_vm9, %v545_v46 }
  0xd7   : > { %v642_v47 = vpop.permute.xlu0 %641  ;;  %v650_v49 = vpop.permute.xlu1 %649 }
 0x1a9   : > { %v633_v48 = vpop.f32.mrb[0].mxu0 }
 0x1aa   : > { %v644_v50 = vmul.f32 %v642_v47, %v633_v48  ;;  %v635_v51 = vpop.f32.mrb[1].mxu0 }
 0x1ab   : > { %v645_v52 = vmul.f32 %v642_v47, %v635_v51  ;;  %v823_v51 = vrot.slane %v1081_v44, %v1488_v10 }
 0x1ac   : > { %v652_v53 = vadd.f32 %v650_v49, %v644_v50  ;;  %v819_v50 = vrot.slane %v1081_v44, %v1486_v9 }
 0x1ad   : > { %v653_v54 = vadd.f32 %v650_v49, %v645_v52 }
 0x1ae   : > { %v654_v55 = vmax.f32 %v652_v53, 0.0  ;;  %v1080_v53 = vld [vmem:[%s1735_s7 + $0x6] ss:$8 sm:$0x3] }
 0x1af   : > { %v655_v56 = vmax.f32 %v653_v54, 0.0 }
 0x1b0   : > { %756 = vst [vmem:[#allocation2 + $0x20] sm:$0xf] %v654_v55  ;;  %678 = vrot.lane.b32.xlu1 %v654_v55, %s1268_s26 }
 0x1b1   : > { %757 = vst [vmem:[#allocation2 + $0x28] sm:$0xf] %v655_v56  ;;  %680 = vrot.lane.b32.xlu0 %v655_v56, %s1268_s26  ;;  %s1750_s26 = smov 113  }
 0x1b4   : > { %728 = vrot.lane.b32.xlu1 %v654_v55, %s1267_s24 }
 0x1b5   : > { %730 = vrot.lane.b32.xlu0 %v655_v56, %s1267_s24  ;;  %s1751_s24 = smov 111  }
 0x1b8   : > { %656 = vrot.lane.b32.xlu1 %v654_v55, %s1269_s16 }
 0x1b9   : > { %658 = vrot.lane.b32.xlu0 %v655_v56, %s1269_s16 }
 0x1bc   : > { %706 = vrot.lane.b32.xlu1 %v654_v55, %s1270_s12 }
 0x1bd   : > { %708 = vrot.lane.b32.xlu0 %v655_v56, %s1270_s12 }
 0x1c0   : > { %758 = vrot.lane.b32.xlu1 %v654_v55, %s1271_s23 }
 0x1c1   : > { %760 = vrot.lane.b32.xlu0 %v655_v56, %s1271_s23 }
 0x1c4   : > { %808 = vrot.lane.b32.xlu1 %v654_v55, %s1272_s19 }
 0x1c5   : > { %810 = vrot.lane.b32.xlu0 %v655_v56, %s1272_s19  ;;  %s973_s19 = scalar_lea.sflag [#allocation5], %s1428_s13 }
 0x1c8   : > { %786 = vrot.lane.b32.xlu1 %v654_v55, %s1750_s26 }
 0x1c9   : > { %788 = vrot.lane.b32.xlu0 %v655_v56, %s1750_s26  ;;  %s1092_s26 = sshll.u32 %s1344_s9, 7  ;;  %s1277_s9 = smov [#allocation6]  }
 0x1ca   : > { %s1684_s23 = scalar_lea.hbm %s1736_s8, %s1092_s26  ;;  %s1202_s21 = sshll.u32 %s1277_s9, 4  ;;  %s1203_s21 = int_to_ptr.vmem [resolvable:$false] %s1202_s21 }
 0x1cb   : > { %s1204_s22 = scalar_lea.vmem %s1203_s21, 256 }
 0x1cc   : > { %836 = vrot.lane.b32.xlu1 %v654_v55, %s1751_s24 }
 0x1cd   : > { %838 = vrot.lane.b32.xlu0 %v655_v56, %s1751_s24  ;;  %s1752_s24 = sshll.u32 %s1428_s13, 3 }
 0x1ce   : > { %s321_s16 = scalar_lea.vmem [#allocation6], %s1752_s24 }
 0x1cf   : > { %s987_s15 = sshll.u32 %s321_s16, 4  ;;  %s1686_s15 = int_to_ptr.vmem [resolvable:$true] %s987_s15 }
 0x1d0   : > { %952 = vperm.xlu1 %1166, %v949_v57   ;;  %s1198_s25 = scalar_lea.vmem %s1686_s15, 128  ;;  %p1205_p7 = scmp.lt.s32.totalorder %s1686_s15, %s1203_s21 }
 0x1d1   : > { %960 = vperm.xlu0 %1165, %v957_v58   ;;  %p1199_p6 = scmp.ne.s32.totalorder %s1686_s15, %s1198_s25  ;;  %p1206_p10 = scmp.lt.s32.totalorder %s1204_s22, %s1198_s25 }
 0x1d3   : > { %p1200_p12 = pnand %p1199_p6, %p1753_p11  ;;  %p1207_p2 = por %p1206_p10, %p1205_p7 }
 0x1d5   : > { %p1201_p13 = pneg %p1200_p12 }
 0x1d7   : > { %p1208_p4 = pnand %p1207_p2, %p1201_p13 }
 0x222   : > { %v679_v62 = vpop.permute.xlu1 %678 }
 0x223   : > { %v681_v2 = vpop.permute.xlu0 %680 }
 0x224   : > { %v682_v3 = vsel %vm355_vm2, %v679_v62, %v681_v2  ;;  %v683_v4 = vsel %vm355_vm2, %v681_v2, %v679_v62  ;;  %v801_v62 = vrot.slane %v1080_v53, %v1488_v10  ;;  %v1082_v2 = vld [vmem:[%s1735_s7 + $0x10] ss:$8 sm:$0x3] }
 0x225   : > { %v696_v5 = vmul.f32 %v689_v60, %v683_v4  ;;  %v697_v6 = vmul.f32 %v693_v61, %v682_v3  ;;  %v797_v61 = vrot.slane %v1080_v53, %v1486_v9 }
 0x226   : > { %v729_v12 = vpop.permute.xlu1 %728 }
 0x227   : > { %v700_v14 = vrot.slane %v696_v5, 4  ;;  %v701_v15 = vrot.slane %v697_v6, 4  ;;  %v731_v16 = vpop.permute.xlu0 %730 }
 0x228   : > { %v732_v17 = vsel %vm409_vm0, %v729_v12, %v731_v16  ;;  %v733_v18 = vsel %vm409_vm0, %v731_v16, %v729_v12 }
 0x229   : > { %704 = vst [vmem:[#allocation2] sm:$0xf0] %v700_v14  ;;  %705 = vst [vmem:[#allocation2 + $0x8] sm:$0xf0] %v701_v15  ;;  %v746_v19 = vmul.f32 %v739_v7, %v733_v18  ;;  %v747_v20 = vmul.f32 %v743_v11, %v732_v17 }
 0x22a   : > { %v657_v23 = vpop.permute.xlu1 %656 }
 0x22b   : > { %v750_v25 = vrot.slane %v746_v19, 4  ;;  %v751_v26 = vrot.slane %v747_v20, 4  ;;  %v659_v27 = vpop.permute.xlu0 %658  ;;  %v847_v19 = vrot.slane %v1082_v2, %v1486_v9  ;;  %v851_v20 = vrot.slane %v1082_v2, %v1488_v10 }
 0x22c   : > { %v660_v28 = vsel %vm332_vm1, %v657_v23, %v659_v27  ;;  %v661_v29 = vsel %vm332_vm1, %v659_v27, %v657_v23 }
 0x22d   : > { %754 = vst [vmem:[#allocation2 + $0x10] sm:$0xf0] %v750_v25  ;;  %755 = vst [vmem:[#allocation2 + $0x18] sm:$0xf0] %v751_v26  ;;  %v674_v30 = vmul.f32 %v667_v21, %v661_v29  ;;  %v675_v31 = vmul.f32 %v671_v22, %v660_v28 }
 0x22e   : > { %v707_v34 = vpop.permute.xlu1 %706 }
 0x22f   : > { %676 = vst [vmem:[#allocation2] sm:$0xf] %v674_v30  ;;  %677 = vst [vmem:[#allocation2 + $0x8] sm:$0xf] %v675_v31  ;;  %v709_v36 = vpop.permute.xlu0 %708 }
 0x230   : > { %v710_v37 = vsel %vm385_vm3, %v707_v34, %v709_v36  ;;  %v711_v38 = vsel %vm385_vm3, %v709_v36, %v707_v34 }
 0x231   : > { %v724_v39 = vmul.f32 %v717_v32, %v711_v38  ;;  %v725_v40 = vmul.f32 %v721_v33, %v710_v37 }
 0x232   : > { %v759_v43 = vpop.permute.xlu1 %758 }
 0x233   : > { %726 = vst [vmem:[#allocation2 + $0x10] sm:$0xf] %v724_v39  ;;  %727 = vst [vmem:[#allocation2 + $0x18] sm:$0xf] %v725_v40  ;;  %v761_v45 = vpop.permute.xlu0 %760 }
 0x234   : > { %v762_v46 = vsel %vm441_vm4, %v759_v43, %v761_v45  ;;  %v763_v47 = vsel %vm441_vm4, %v761_v45, %v759_v43 }
 0x235   : > { %v776_v48 = vmul.f32 %v769_v41, %v762_v46  ;;  %v777_v49 = vmul.f32 %v773_v42, %v763_v47 }
 0x236   : > { %v809_v52 = vpop.permute.xlu1 %808  ;;  %v860_v63 = vld [vmem:[#allocation2 + $0x8] sm:$0xff]  ;;  %v859_v5 = vld [vmem:[#allocation2] sm:$0xff] }
 0x237   : > { %v780_v54 = vrot.slane %v776_v48, 4  ;;  %v781_v55 = vrot.slane %v777_v49, 4  ;;  %v811_v56 = vpop.permute.xlu0 %810 }
 0x238   : > { %v812_v57 = vsel %vm495_vm5, %v809_v52, %v811_v56  ;;  %v813_v58 = vsel %vm495_vm5, %v811_v56, %v809_v52 }
 0x239   : > { %784 = vst [vmem:[#allocation2 + $0x20] sm:$0xf0] %v780_v54  ;;  %785 = vst [vmem:[#allocation2 + $0x28] sm:$0xf0] %v781_v55  ;;  %v826_v59 = vmul.f32 %v819_v50, %v812_v57  ;;  %v827_v60 = vmul.f32 %v823_v51, %v813_v58 }
 0x23a   : > { %v787_v3 = vpop.permute.xlu1 %786  ;;  %v862_v4 = vld [vmem:[#allocation2 + $0x18] sm:$0xff]  ;;  %v861_v6 = vld [vmem:[#allocation2 + $0x10] sm:$0xff] }
 0x23b   : > { %v830_v7 = vrot.slane %v826_v59, 4  ;;  %v831_v11 = vrot.slane %v827_v60, 4  ;;  %v789_v12 = vpop.permute.xlu0 %788  ;;  %v1101_v13 = vpack.c.bf16 %v862_v4, %v860_v63  ;;  %v1103_v14 = vpack.c.bf16 %v861_v6, %v859_v5 }
 0x23c   : > { %v790_v15 = vsel %vm471_vm6, %v787_v3, %v789_v12  ;;  %v791_v16 = vsel %vm471_vm6, %v789_v12, %v787_v3 }
 0x23d   : > { %834 = vst [vmem:[#allocation2 + $0x30] sm:$0xf0] %v830_v7  ;;  %835 = vst [vmem:[#allocation2 + $0x38] sm:$0xf0] %v831_v11  ;;  %v804_v17 = vmul.f32 %v797_v61, %v790_v15  ;;  %v805_v18 = vmul.f32 %v801_v62, %v791_v16  ;;  %1102 = vmatprep.subr.bf16.mxu1 %v1101_v13 }
 0x23e   : > { %v837_v21 = vpop.permute.xlu1 %836  ;;  %1104 = vmatpush1.bf16.msra.mxu1 %v1103_v14 }
 0x23f   : > { %806 = vst [vmem:[#allocation2 + $0x30] sm:$0xf] %v804_v17  ;;  %807 = vst [vmem:[#allocation2 + $0x38] sm:$0xf] %v805_v18  ;;  %v839_v22 = vpop.permute.xlu0 %838 }
 0x240   : > { %v840_v23 = vsel %vm525_vm7, %v837_v21, %v839_v22  ;;  %v841_v24 = vsel %vm525_vm7, %v839_v22, %v837_v21  ;;  %v864_v27 = vld [vmem:[#allocation2 + $0x28] sm:$0xff]  ;;  %v863_v9 = vld [vmem:[#allocation2 + $0x20] sm:$0xff] }
 0x241   : > { %v854_v25 = vmul.f32 %v847_v19, %v840_v23  ;;  %v855_v26 = vmul.f32 %v851_v20, %v841_v24 }
 0x243   : > { %856 = vst [vmem:[#allocation2 + $0x40] sm:$0xf] %v854_v25  ;;  %857 = vst [vmem:[#allocation2 + $0x48] sm:$0xf] %v855_v26 }
 0x246   : > { %v866_v28 = vld [vmem:[#allocation2 + $0x38] sm:$0xff]  ;;  %v865_v29 = vld [vmem:[#allocation2 + $0x30] sm:$0xff] }
 0x247   : > { %v1105_v10 = vpack.c.bf16 %v866_v28, %v864_v27  ;;  %v1107_v30 = vpack.c.bf16 %v865_v29, %v863_v9 }
 0x249   : > { %1106 = vmatprep.subr.bf16.mxu1 %v1105_v10 }
 0x24a   : > { %1108 = vmatpush1.bf16.msra.mxu1 %v1107_v30  ;;  %v868_v31 = vld [vmem:[#allocation2 + $0x48] sm:$0xf]  ;;  %v867_v32 = vld [vmem:[#allocation2 + $0x40] sm:$0xf] }
 0x24b   : > { %1083 = vmatprep.subr.msk.mxu1 %vm560_vm8, %v868_v31 }
 0x24e   : > { %1084 = vmatpush1.msk.msra.mxu1 %vm560_vm8, %v867_v32 }
 0x24f   : > { %1085 = vmatmul.mubr.msk.f32.vlgmr.msra.gmra.mrb[0].mxu1 %vm556_vm9, %v858_v8  ;;  %v953_v33 = vpop.permute.xlu1 %952 }
 0x250   : > { %v961_v37 = vpop.permute.xlu0 %960 }
 0x322   : > { %v944_v34 = vpop.f32.mrb[0].mxu1 }
 0x323   : > { %v955_v35 = vmul.f32 %v953_v33, %v944_v34  ;;  %v946_v36 = vpop.f32.mrb[1].mxu1 }
 0x324   : > { %v956_v38 = vmul.f32 %v953_v33, %v946_v36 }
 0x325   : > { %v963_v39 = vadd.f32 %v961_v37, %v955_v35 }
 0x326   : > { %v964_v40 = vadd.f32 %v961_v37, %v956_v38 }
 0x327   : > { %v965_v41 = vadd.f32 %v963_v39, %v1438_v0 }
 0x328   : > { %v966_v42 = vadd.f32 %v964_v40, %v1447_v1 }
 0x32a   : > { %v969_v43 = vcombine.low %v965_v41, %v966_v42 }
 0x32c   : > { %971 = vst [vmem:[%s321_s16] sm:$0xff] %v969_v43 }
 0x32d   : > { %1211 = shalt.err (!%p1208_p4)
}
 0x32e   : > { %s1212_s13 = scalar_lea.hbm %s1684_s23, 128  ;;  %s1216_s24 = scalar_lea.hbm %s1736_s8, 256 }
 0x32f   : > { %p1213_p5 = scmp.ne.s32.totalorder %s1684_s23, %s1212_s13  ;;  %p1217_p0 = scmp.lt.u32.totalorder %s1684_s23, %s1736_s8 }
 0x330   : > { %p1218_p1 = scmp.lt.u32.totalorder %s1216_s24, %s1212_s13  ;;  %p1220_p6 = scmp.lt.u32.totalorder %s1212_s13, %s1684_s23 }
 0x331   : > { %p1214_p8 = pnand %p1213_p5, %p1753_p11 }
 0x332   : > { %p1219_p3 = por %p1218_p1, %p1217_p0 }
 0x333   : > { %p1215_p9 = pneg %p1214_p8 }
 0x334   : > { %p1221_p12 = por %p1220_p6, %p1219_p3 }
 0x336   : > { %p1222_p13 = pnand %p1221_p12, %p1215_p9 }
 0x338   : > { %1225 = shalt.err (!%p1222_p13)
}
 0x339   : > { %1111 = dma.vmem_to_hbm [thread:$0]  (%p1753_p11), %s1686_s15, 128, %s1684_s23, %s973_s19  }
 0x33a PF: > { %s999_s20 = sand.u32 1, %s1252_s27   ;;  %p1754_p7 = scmp.ne.s32.totalorder %s1746_s18, 0 }
 0x33b   : > { %p1755_p10 = scmp.ge.s32.totalorder %s1264_s30, 2  ;;  %s1000_s25 = scalar_lea.sflag [#allocation5], %s999_s20 }
 0x33d   : > { %p1118_p2 = pnand %p1755_p10, %p1754_p7 }
 0x33f   : > { %1247 = dma.done.wait (!%p1118_p2), %s1000_s25, 128  }
 0x340   : > { %1249 = vsyncadd (!%p1118_p2), %s1000_s25, 4294967168  ;;  %p21_p4 = scmp.ge.s32.totalorder %s1348_s11, 4   ;;  %s1756_s27 = smov %s1256_s28 }
 0x341   : > { %s1757_s28 = smov %s1260_s29  ;;  %s1758_s29 = smov %s1360_s14 }
 0x342   : > { %s1759_s30 = smov %s1348_s11  ;;  %23 = sbr.rel (!%p21_p4) target bundleno = 5 (0x5), region = 104 }
 0x349   :  { %1005 = vsyncpa [#allocation4], 1 }
 0x34a   :  { %1007 = vsyncpa [#allocation4 + $0x1], 1 }
 0x34b   :  { %1008 = vsyncpa [#allocation5], 1 }
 0x34c   :  { %1010 = vsyncpa [#allocation5 + $0x1], 1 }

</bundles_post_ra>
